<compile_context>
chip_gen: v7x
topology: tpu7x:2x2x1
jax: 0.10.0
libtpu: 0.0.40
codegen_flags: <defaults>
</compile_context>

<pallas_src>
import functools

import numpy as np
import jax
import jax.numpy as jnp
from jax import lax
from jax.experimental import pallas as pl
from jax.experimental.pallas import tpu as pltpu


def _round_up(x, m):
    return (x + m - 1) // m * m


def _cdiv(a, b):
    return -(-a // b)


# ------------------------------------------------------------------------------
# Epilogue (runs once, on the last grid step): cosine logits from the Gram matrix
# and exact f32 norms, masked row-wise cross entropy, minus normalized entropy.
# ------------------------------------------------------------------------------
def _epilogue(out_ref, gram, ssq, ent_sum, *, feature_num, temperature, n_valid):
    Kp = gram.shape[0]
    K = 2 * feature_num
    eps = jnp.float32(1e-12)

    row = lax.broadcasted_iota(jnp.int32, (Kp, Kp), 0)
    col = lax.broadcasted_iota(jnp.int32, (Kp, Kp), 1)
    eye = row == col

    inv = 1.0 / jnp.maximum(jnp.sqrt(ssq), eps)            # (1, Kp) or (Kp, 1)
    if inv.shape[0] == 1:                                   # row vector given
        inv_row = inv
        inv_col = jnp.sum(jnp.where(eye, jnp.broadcast_to(inv_row, (Kp, Kp)), 0.0),
                          axis=1, keepdims=True)
    else:                                                   # column vector given
        inv_col = inv
        inv_row = jnp.sum(jnp.where(eye, jnp.broadcast_to(inv_col, (Kp, Kp)), 0.0),
                          axis=0, keepdims=True)

    # sim[i, j] = <f_i, f_j> / (||f_i|| * ||f_j||) / temperature
    sim = gram * (inv_col * jnp.float32(1.0 / temperature)) * inv_row

    real = (row < K) & (col < K)
    # Positives: sim[i, (i + feature_num) % K].
    pos_mask = real & (col == ((row + feature_num) % K))
    pos = jnp.sum(jnp.where(pos_mask, sim, 0.0), axis=1, keepdims=True)

    # CrossEntropyLoss(labels=0) row-wise == logsumexp over {all j != i} - pos.
    keep = real & (col != row)
    sim_m = jnp.where(keep, sim, jnp.float32(-1e30))
    m = jnp.max(sim_m, axis=1, keepdims=True)
    lse = m + jnp.log(jnp.sum(jnp.exp(sim_m - m), axis=1, keepdims=True))

    row_ok = lax.broadcasted_iota(jnp.int32, (Kp, 1), 0) < K
    ce = jnp.sum(jnp.where(row_ok, lse - pos, 0.0)) / jnp.float32(K)

    neloss = ent_sum / (jnp.float32(K * n_valid) * jnp.log(jnp.float32(2.0)))
    out_ref[0, 0] = ce - neloss


# ------------------------------------------------------------------------------
# Hot-loop kernels (one streamed batch tile per grid step).
# ------------------------------------------------------------------------------
def _fmajor_kernel(f_ref, out_ref, gram_ref, ssq_ref, ent_ref, *,
                   feature_num, temperature, n_valid, matmul_dtype):
    """Feature-major layout: input (Kp, n_pad), block = (Kp, tile_n)."""
    t = pl.program_id(0)

    @pl.when(t == 0)
    def _init():
        gram_ref[...] = jnp.zeros_like(gram_ref)
        ssq_ref[...] = jnp.zeros_like(ssq_ref)
        ent_ref[...] = jnp.zeros_like(ent_ref)

    f = f_ref[...].astype(jnp.float32)                         # (Kp, tile_n)
    eps = jnp.float32(1e-12)
    # Zero padding contributes exactly 0.0 here (f32): no per-tile masks needed.
    ent = -f * jnp.log(f + eps) - (1.0 - f) * jnp.log(1.0 - f + eps)
    ent_ref[...] += jnp.sum(ent, axis=1, keepdims=True)        # (Kp, 1)
    ssq_ref[...] += jnp.sum(f * f, axis=1, keepdims=True)      # exact f32 norms

    f_mm = f.astype(matmul_dtype)
    gram_ref[...] += lax.dot_general(                          # G += f f^T  (MXU)
        f_mm, f_mm, (((1,), (1,)), ((), ())),
        preferred_element_type=jnp.float32)

    @pl.when(t == pl.num_programs(0) - 1)
    def _finalize():
        _epilogue(out_ref, gram_ref[...], ssq_ref[...], jnp.sum(ent_ref[...]),
                  feature_num=feature_num, temperature=temperature,
                  n_valid=n_valid)


def _bmajor_kernel(f_ref, out_ref, gram_ref, ssq_ref, ent_ref, *,
                   feature_num, temperature, n_valid, matmul_dtype):
    """Batch-major layout: input (n_pad, Kp), block = (tile_n, Kp)."""
    t = pl.program_id(0)

    @pl.when(t == 0)
    def _init():
        gram_ref[...] = jnp.zeros_like(gram_ref)
        ssq_ref[...] = jnp.zeros_like(ssq_ref)
        ent_ref[...] = jnp.zeros_like(ent_ref)

    f = f_ref[...].astype(jnp.float32)                         # (tile_n, Kp)
    eps = jnp.float32(1e-12)
    ent = -f * jnp.log(f + eps) - (1.0 - f) * jnp.log(1.0 - f + eps)
    ent_ref[...] += jnp.sum(ent, axis=0, keepdims=True)        # (1, Kp)
    ssq_ref[...] += jnp.sum(f * f, axis=0, keepdims=True)

    f_mm = f.astype(matmul_dtype)
    gram_ref[...] += lax.dot_general(                          # G += f^T f  (MXU)
        f_mm, f_mm, (((0,), (0,)), ((), ())),
        preferred_element_type=jnp.float32)

    @pl.when(t == pl.num_programs(0) - 1)
    def _finalize():
        _epilogue(out_ref, gram_ref[...], ssq_ref[...], jnp.sum(ent_ref[...]),
                  feature_num=feature_num, temperature=temperature,
                  n_valid=n_valid)


# ------------------------------------------------------------------------------
# Wrapper
# ------------------------------------------------------------------------------
def feature_loss(f1, f2, feature_num, temperature, *,
                 layout="auto",
                 storage_dtype=jnp.bfloat16,
                 matmul_dtype=jnp.bfloat16,
                 max_tile_n=2048):
    """Pallas equivalent of FeatureLoss.forward(f1, f2).

    f1, f2        : (batch, feature_num) sigmoid-activated predictions.
    storage_dtype : dtype of the streamed HBM copy (bf16 halves traffic; math is f32).
    matmul_dtype  : MXU operand dtype for the Gram accumulation (norms stay f32).
    layout        : "auto" | "feature_major" | "batch_major".
    """
    assert f1.shape == f2.shape and f1.shape[1] == feature_num
    n = f1.shape[0]
    K = 2 * feature_num

    if layout == "auto":
        # Feature-major avoids 128-lane feature padding unless K is already a
        # large multiple of 128 (then batch-major also streams with no padding).
        layout = "batch_major" if (K % 128 == 0 and K >= 512) else "feature_major"
    assert layout in ("feature_major", "batch_major"), layout

    itemsize = np.dtype(storage_dtype).itemsize

    if layout == "feature_major":
        # (K, batch): features on sublanes (cheap padding), batch on the 128 lanes.
        Kp = _round_up(K, 16)
        gran = 128
        fb = jnp.concatenate([f1, f2], axis=1).T.astype(storage_dtype)   # (K, n)
    else:
        # (batch, K): features on the 128 lanes (K a large multiple of 128).
        Kp = _round_up(max(K, 128), 128)
        gran = 16
        fb = jnp.concatenate([f1, f2], axis=1).astype(storage_dtype)     # (n, K)

    # Balanced batch tiles: cap by VMEM (double-buffered input <= ~16 MiB), keep
    # tiles equal-sized so the last tile is never mostly padding, and respect the
    # (sublane, lane) granularity.
    vmem_cap = max(gran, (16 << 20) // (2 * Kp * itemsize) // gran * gran)
    max_tile = max(gran, (min(max_tile_n, vmem_cap) // gran) * gran)
    num_tiles = _cdiv(n, max_tile)
    tile_n = min(max_tile, _round_up(_cdiv(n, num_tiles), gran))
    num_tiles = _cdiv(n, tile_n)
    n_pad = tile_n * num_tiles

    if layout == "feature_major":
        fb = jnp.pad(fb, ((0, Kp - K), (0, n_pad - n)))
        in_spec = pl.BlockSpec((Kp, tile_n), lambda t: (0, t))
        vec_shape = (Kp, 1)
        kernel_fn = _fmajor_kernel
    else:
        fb = jnp.pad(fb, ((0, n_pad - n), (0, Kp - K)))
        in_spec = pl.BlockSpec((tile_n, Kp), lambda t: (t, 0))
        vec_shape = (1, Kp)
        kernel_fn = _bmajor_kernel

    # TODO(synk): for Kp >= 2048 the (Kp, Kp) f32 Gram scratch no longer fits v7x's
    # 64 MiB VMEM — split the Gram into column panels via a second grid axis.
    # TODO(synk): add a leading 2-way "parallel" axis (per-core Gram/ssq/ent
    # partials + tiny combine) so v7x's second TensorCore is used.
    gram_bytes = Kp * Kp * 4
    blk_bytes = tile_n * Kp * itemsize
    vmem_limit = int(min(64 << 20,
                         max(32 << 20, gram_bytes + 3 * blk_bytes + (4 << 20))))

    kernel = functools.partial(
        kernel_fn,
        feature_num=feature_num,
        temperature=float(temperature),
        n_valid=n,
        matmul_dtype=matmul_dtype,
    )

    out = pl.pallas_call(
        kernel,
        out_shape=jax.ShapeDtypeStruct((1, 1), jnp.float32),
        grid_spec=pltpu.PrefetchScalarGridSpec(
            num_scalar_prefetch=0,
            grid=(num_tiles,),
            in_specs=[in_spec],
            out_specs=pl.BlockSpec((1, 1), lambda t: (0, 0),
                                   memory_space=pltpu.MemorySpace.SMEM),
            scratch_shapes=[
                pltpu.VMEM((Kp, Kp), jnp.float32),    # Gram accumulator
                pltpu.VMEM(vec_shape, jnp.float32),   # sum-of-squares accumulator
                pltpu.VMEM(vec_shape, jnp.float32),   # per-feature entropy accumulator
            ],
        ),
        compiler_params=pltpu.CompilerParams(
            dimension_semantics=("arbitrary",),
            vmem_limit_bytes=vmem_limit,
        ),
        cost_estimate=pl.CostEstimate(
            flops=2 * n_pad * Kp * Kp + 8 * Kp * Kp,
            transcendentals=2 * n_pad * Kp + Kp * Kp,
            bytes_accessed=n_pad * Kp * itemsize + 4,
        ),
    )(fb)
    return out[0, 0]


# ------------------------------------------------------------------------------
# Pure-JAX reference mirroring the PyTorch forward.
# ------------------------------------------------------------------------------
def _feature_loss_ref(f1, f2, feature_num, temperature):
    f = jnp.concatenate([f1.T, f2.T], axis=0).astype(jnp.float32)
    K = 2 * feature_num
    eps = 1e-12
    ent = -f * jnp.log(f + eps) - (1.0 - f) * jnp.log(1.0 - f + eps)
    neloss = jnp.mean(ent) / jnp.log(2.0)
    fn = f / jnp.maximum(jnp.linalg.norm(f, axis=1, keepdims=True), 1e-12)
    sim = fn @ fn.T / temperature
    idx = jnp.arange(K)
    pos = sim[idx, (idx + feature_num) % K]
    sim_masked = jnp.where(jnp.eye(K, dtype=bool), -jnp.inf, sim)
    lse = jax.scipy.special.logsumexp(sim_masked, axis=1)
    ce = jnp.mean(lse - pos)
    return ce - neloss


if __name__ == "__main__":
    key = jax.random.PRNGKey(0)
    temperature = 0.5
    k1, k2, k3, k4 = jax.random.split(key, 4)

    # --- Case 1: small feature_num -> feature-major streaming layout -----------
    feature_num = 8
    batch = 300                       # 3 grid tiles of 128 with a padded last tile
    f1 = jax.nn.sigmoid(jax.random.normal(k1, (batch, feature_num), jnp.float32))
    f2 = jax.nn.sigmoid(jax.random.normal(k2, (batch, feature_num), jnp.float32))
    ref = _feature_loss_ref(f1, f2, feature_num, temperature)

    # Fast default path: bf16 streaming + bf16 MXU operands.
    loss_fast = jax.block_until_ready(
        feature_loss(f1, f2, feature_num, temperature, max_tile_n=128))
    assert jnp.allclose(loss_fast, ref, rtol=5e-2, atol=5e-2), (loss_fast, ref)

    # Exact path: f32 storage + f32 MXU operands.
    loss_exact = jax.block_until_ready(
        feature_loss(f1, f2, feature_num, temperature,
                     storage_dtype=jnp.float32, matmul_dtype=jnp.float32,
                     max_tile_n=128))
    assert jnp.allclose(loss_exact, ref, rtol=1e-4, atol=1e-4), (loss_exact, ref)

    # --- Case 2: K a multiple of 128 -> batch-major layout ----------------------
    feature_num2 = 64
    batch2 = 200
    f1b = jax.nn.sigmoid(jax.random.normal(k3, (batch2, feature_num2), jnp.float32))
    f2b = jax.nn.sigmoid(jax.random.normal(k4, (batch2, feature_num2), jnp.float32))
    ref_b = _feature_loss_ref(f1b, f2b, feature_num2, temperature)

    loss_bm_fast = jax.block_until_ready(
        feature_loss(f1b, f2b, feature_num2, temperature,
                     layout="batch_major", max_tile_n=128))
    assert jnp.allclose(loss_bm_fast, ref_b, rtol=5e-2, atol=5e-2), (loss_bm_fast, ref_b)

    loss_bm_exact = jax.block_until_ready(
        feature_loss(f1b, f2b, feature_num2, temperature, layout="batch_major",
                     storage_dtype=jnp.float32, matmul_dtype=jnp.float32,
                     max_tile_n=128))
    assert jnp.allclose(loss_bm_exact, ref_b, rtol=1e-4, atol=1e-4), (loss_bm_exact, ref_b)

    print("KERNEL_OK")
</pallas_src>

<mosaic_0001>
module attributes {stable_mosaic.version = 11 : i64} {
  func.func @_fmajor_kernel(%arg0: i32, %arg1: memref<16x128xbf16, #tpu.memory_space<vmem>>, %arg2: memref<1x1xf32, #tpu.memory_space<smem>>, %arg3: memref<16x16xf32, #tpu.memory_space<vmem>>, %arg4: memref<16x1xf32, #tpu.memory_space<vmem>>, %arg5: memref<16x1xf32, #tpu.memory_space<vmem>>) attributes {dimension_semantics = [#tpu.dimension_semantics<arbitrary>], iteration_bounds = array<i64: 3>, scalar_prefetch = 0 : i64, scratch_operands = 3 : i64, tpu.core_type = #tpu.core_type<tc>, window_params = [{transform_indices = @transform_0, window_bounds = array<i64: 16, 128>}, {transform_indices = @transform_1, window_bounds = array<i64: 1, 1>}]} {
    %c0_i32 = arith.constant 0 : i32
    %0 = arith.cmpi eq, %arg0, %c0_i32 : i32
    %1 = arith.extui %0 : i1 to i32
    %c0_i32_0 = arith.constant 0 : i32
    %2 = arith.cmpi ne, %1, %c0_i32_0 : i32
    scf.if %2 {
      %cst_22 = arith.constant 0.000000e+00 : f32
      %39 = vector.broadcast %cst_22 : f32 to vector<16x16xf32>
      %c0_23 = arith.constant 0 : index
      %c0_24 = arith.constant 0 : index
      %40 = vector.load %arg3[%c0_23, %c0_24] : memref<16x16xf32, #tpu.memory_space<vmem>>, vector<16x16xf32>
      tpu.vector_store %arg3[%c0_23, %c0_24], %39 {strides = array<i32>} : memref<16x16xf32, #tpu.memory_space<vmem>>, vector<16x16xf32>,
      %cst_25 = arith.constant 0.000000e+00 : f32
      %41 = vector.broadcast %cst_25 : f32 to vector<16x1xf32>
      %c0_26 = arith.constant 0 : index
      %c0_27 = arith.constant 0 : index
      %42 = vector.load %arg4[%c0_26, %c0_27] : memref<16x1xf32, #tpu.memory_space<vmem>>, vector<16x1xf32>
      tpu.vector_store %arg4[%c0_26, %c0_27], %41 {strides = array<i32>} : memref<16x1xf32, #tpu.memory_space<vmem>>, vector<16x1xf32>,
      %cst_28 = arith.constant 0.000000e+00 : f32
      %43 = vector.broadcast %cst_28 : f32 to vector<16x1xf32>
      %c0_29 = arith.constant 0 : index
      %c0_30 = arith.constant 0 : index
      %44 = vector.load %arg5[%c0_29, %c0_30] : memref<16x1xf32, #tpu.memory_space<vmem>>, vector<16x1xf32>
      tpu.vector_store %arg5[%c0_29, %c0_30], %43 {strides = array<i32>} : memref<16x1xf32, #tpu.memory_space<vmem>>, vector<16x1xf32>,
    } else {
    }
    %c0 = arith.constant 0 : index
    %c0_1 = arith.constant 0 : index
    %3 = vector.load %arg1[%c0, %c0_1] : memref<16x128xbf16, #tpu.memory_space<vmem>>, vector<16x128xbf16>
    %4 = arith.extf %3 : vector<16x128xbf16> to vector<16x128xf32>
    %cst = arith.constant 0.000000e+00 : f32
    %5 = vector.broadcast %cst : f32 to vector<16x128xf32>
    %6 = arith.subf %5, %4 : vector<16x128xf32>
    %cst_2 = arith.constant 9.99999996E-13 : f32
    %7 = vector.broadcast %cst_2 : f32 to vector<16x128xf32>
    %8 = arith.addf %4, %7 : vector<16x128xf32>
    %9 = math.log %8 : vector<16x128xf32>
    %10 = arith.mulf %6, %9 : vector<16x128xf32>
    %cst_3 = arith.constant 1.000000e+00 : f32
    %11 = vector.broadcast %cst_3 : f32 to vector<16x128xf32>
    %12 = arith.subf %11, %4 : vector<16x128xf32>
    %cst_4 = arith.constant 1.000000e+00 : f32
    %13 = vector.broadcast %cst_4 : f32 to vector<16x128xf32>
    %14 = arith.subf %13, %4 : vector<16x128xf32>
    %cst_5 = arith.constant 9.99999996E-13 : f32
    %15 = vector.broadcast %cst_5 : f32 to vector<16x128xf32>
    %16 = arith.addf %14, %15 : vector<16x128xf32>
    %17 = math.log %16 : vector<16x128xf32>
    %18 = arith.mulf %12, %17 : vector<16x128xf32>
    %19 = arith.subf %10, %18 : vector<16x128xf32>
    %c0_6 = arith.constant 0 : index
    %c0_7 = arith.constant 0 : index
    %20 = vector.load %arg5[%c0_6, %c0_7] : memref<16x1xf32, #tpu.memory_space<vmem>>, vector<16x1xf32>
    %cst_8 = arith.constant dense<0.000000e+00> : vector<16xf32>
    %21 = vector.multi_reduction <add>, %19, %cst_8 [1] : vector<16x128xf32> to vector<16xf32>
    %22 = vector.shape_cast %21 : vector<16xf32> to vector<16x1xf32>
    %23 = arith.addf %20, %22 : vector<16x1xf32>
    %c0_9 = arith.constant 0 : index
    %c0_10 = arith.constant 0 : index
    %24 = vector.load %arg5[%c0_9, %c0_10] : memref<16x1xf32, #tpu.memory_space<vmem>>, vector<16x1xf32>
    tpu.vector_store %arg5[%c0_9, %c0_10], %23 {strides = array<i32>} : memref<16x1xf32, #tpu.memory_space<vmem>>, vector<16x1xf32>,
    %c0_11 = arith.constant 0 : index
    %c0_12 = arith.constant 0 : index
    %25 = vector.load %arg4[%c0_11, %c0_12] : memref<16x1xf32, #tpu.memory_space<vmem>>, vector<16x1xf32>
    %26 = arith.mulf %4, %4 : vector<16x128xf32>
    %cst_13 = arith.constant dense<0.000000e+00> : vector<16xf32>
    %27 = vector.multi_reduction <add>, %26, %cst_13 [1] : vector<16x128xf32> to vector<16xf32>
    %28 = vector.shape_cast %27 : vector<16xf32> to vector<16x1xf32>
    %29 = arith.addf %25, %28 : vector<16x1xf32>
    %c0_14 = arith.constant 0 : index
    %c0_15 = arith.constant 0 : index
    %30 = vector.load %arg4[%c0_14, %c0_15] : memref<16x1xf32, #tpu.memory_space<vmem>>, vector<16x1xf32>
    tpu.vector_store %arg4[%c0_14, %c0_15], %29 {strides = array<i32>} : memref<16x1xf32, #tpu.memory_space<vmem>>, vector<16x1xf32>,
    %31 = arith.truncf %4 : vector<16x128xf32> to vector<16x128xbf16>
    %c0_16 = arith.constant 0 : index
    %c0_17 = arith.constant 0 : index
    %32 = vector.load %arg3[%c0_16, %c0_17] : memref<16x16xf32, #tpu.memory_space<vmem>>, vector<16x16xf32>
    %cst_18 = arith.constant dense<0.000000e+00> : vector<16x16xf32>
    %33 = tpu.matmul %31, %31, %cst_18 {dimension_numbers = #tpu.dot_dimension_numbers<[1], [1], [0], [0], [0, 0, 1, 0], [], []>} : vector<16x128xbf16>, vector<16x128xbf16>, vector<16x16xf32> -> vector<16x16xf32>
    %34 = arith.addf %32, %33 : vector<16x16xf32>
    %c0_19 = arith.constant 0 : index
    %c0_20 = arith.constant 0 : index
    %35 = vector.load %arg3[%c0_19, %c0_20] : memref<16x16xf32, #tpu.memory_space<vmem>>, vector<16x16xf32>
    tpu.vector_store %arg3[%c0_19, %c0_20], %34 {strides = array<i32>} : memref<16x16xf32, #tpu.memory_space<vmem>>, vector<16x16xf32>,
    %c2_i32 = arith.constant 2 : i32
    %36 = arith.cmpi eq, %arg0, %c2_i32 : i32
    %37 = arith.extui %36 : i1 to i32
    %c0_i32_21 = arith.constant 0 : i32
    %38 = arith.cmpi ne, %37, %c0_i32_21 : i32
    scf.if %38 {
      %c0_22 = arith.constant 0 : index
      %c0_23 = arith.constant 0 : index
      %39 = vector.load %arg3[%c0_22, %c0_23] : memref<16x16xf32, #tpu.memory_space<vmem>>, vector<16x16xf32>
      %c0_24 = arith.constant 0 : index
      %c0_25 = arith.constant 0 : index
      %40 = vector.load %arg4[%c0_24, %c0_25] : memref<16x1xf32, #tpu.memory_space<vmem>>, vector<16x1xf32>
      %c0_26 = arith.constant 0 : index
      %c0_27 = arith.constant 0 : index
      %41 = vector.load %arg5[%c0_26, %c0_27] : memref<16x1xf32, #tpu.memory_space<vmem>>, vector<16x1xf32>
      %42 = vector.shape_cast %41 : vector<16x1xf32> to vector<1x16x1xf32>
      %cst_28 = arith.constant dense<0.000000e+00> : vector<1xf32>
      %43 = vector.multi_reduction <add>, %42, %cst_28 [1, 2] : vector<1x16x1xf32> to vector<1xf32>
      %44 = vector.shape_cast %43 : vector<1xf32> to vector<1x1x1xf32>
      %45 = vector.extract %44[0, 0, 0] : f32 from vector<1x1x1xf32>
      %46 = tpu.iota {dimensions = array<i32: 0>} : vector<16x16xi32>
      %47 = tpu.iota {dimensions = array<i32: 1>} : vector<16x16xi32>
      %48 = arith.cmpi eq, %46, %47 : vector<16x16xi32>
      %49 = math.sqrt %40 : vector<16x1xf32>
      %cst_29 = arith.constant 9.99999996E-13 : f32
      %50 = vector.broadcast %cst_29 : f32 to vector<16x1xf32>
      %51 = arith.maximumf %49, %50 : vector<16x1xf32>
      %cst_30 = arith.constant 1.000000e+00 : f32
      %52 = vector.broadcast %cst_30 : f32 to vector<16x1xf32>
      %53 = arith.divf %52, %51 : vector<16x1xf32>
      %54 = vector.shape_cast %53 : vector<16x1xf32> to vector<16x1xf32>
      %55 = vector.broadcast %54 : vector<16x1xf32> to vector<16x16xf32>
      %cst_31 = arith.constant 0.000000e+00 : f32
      %56 = vector.broadcast %cst_31 : f32 to vector<16x16xf32>
      %57 = arith.select %48, %55, %56 : vector<16x16xi1>, vector<16x16xf32>
      %cst_32 = arith.constant dense<0.000000e+00> : vector<16xf32>
      %58 = vector.multi_reduction <add>, %57, %cst_32 [0] : vector<16x16xf32> to vector<16xf32>
      %59 = vector.shape_cast %58 : vector<16xf32> to vector<1x16xf32>
      %cst_33 = arith.constant 2.000000e+00 : f32
      %60 = vector.broadcast %cst_33 : f32 to vector<16x1xf32>
      %61 = arith.mulf %53, %60 : vector<16x1xf32>
      %62 = vector.broadcast %61 : vector<16x1xf32> to vector<16x16xf32>
      %63 = arith.mulf %39, %62 : vector<16x16xf32>
      %64 = vector.broadcast %59 : vector<1x16xf32> to vector<16x16xf32>
      %65 = arith.mulf %63, %64 : vector<16x16xf32>
      %c16_i32 = arith.constant 16 : i32
      %66 = vector.broadcast %c16_i32 : i32 to vector<16x16xi32>
      %67 = arith.cmpi slt, %46, %66 : vector<16x16xi32>
      %c16_i32_34 = arith.constant 16 : i32
      %68 = vector.broadcast %c16_i32_34 : i32 to vector<16x16xi32>
      %69 = arith.cmpi slt, %47, %68 : vector<16x16xi32>
      %70 = arith.andi %67, %69 : vector<16x16xi1>
      %c8_i32 = arith.constant 8 : i32
      %71 = vector.broadcast %c8_i32 : i32 to vector<16x16xi32>
      %72 = arith.addi %46, %71 : vector<16x16xi32>
      %c16_i32_35 = arith.constant 16 : i32
      %c0_i32_36 = arith.constant 0 : i32
      %73 = arith.cmpi eq, %c16_i32_35, %c0_i32_36 : i32
      %c1_i32 = arith.constant 1 : i32
      %74 = arith.select %73, %c1_i32, %c16_i32_35 : i32
      %75 = vector.broadcast %74 : i32 to vector<16x16xi32>
      %76 = arith.remsi %72, %75 : vector<16x16xi32>
      %c0_i32_37 = arith.constant 0 : i32
      %77 = vector.broadcast %c0_i32_37 : i32 to vector<16x16xi32>
      %78 = arith.cmpi ne, %76, %77 : vector<16x16xi32>
      %c0_i32_38 = arith.constant 0 : i32
      %79 = vector.broadcast %c0_i32_38 : i32 to vector<16x16xi32>
      %80 = arith.cmpi slt, %76, %79 : vector<16x16xi32>
      %c0_i32_39 = arith.constant 0 : i32
      %81 = arith.cmpi slt, %74, %c0_i32_39 : i32
      %82 = vector.broadcast %81 : i1 to vector<16x16xi1>
      %83 = vector.broadcast %82 : vector<16x16xi1> to vector<16x16xi1>
      %84 = arith.xori %80, %83 : vector<16x16xi1>
      %85 = arith.andi %84, %78 : vector<16x16xi1>
      %86 = vector.broadcast %74 : i32 to vector<16x16xi32>
      %87 = arith.addi %76, %86 : vector<16x16xi32>
      %88 = arith.select %85, %87, %76 : vector<16x16xi1>, vector<16x16xi32>
      %89 = arith.cmpi eq, %47, %88 : vector<16x16xi32>
      %90 = arith.andi %70, %89 : vector<16x16xi1>
      %cst_40 = arith.constant 0.000000e+00 : f32
      %91 = vector.broadcast %cst_40 : f32 to vector<16x16xf32>
      %92 = arith.select %90, %65, %91 : vector<16x16xi1>, vector<16x16xf32>
      %cst_41 = arith.constant dense<0.000000e+00> : vector<16xf32>
      %93 = vector.multi_reduction <add>, %92, %cst_41 [1] : vector<16x16xf32> to vector<16xf32>
      %94 = vector.shape_cast %93 : vector<16xf32> to vector<16x1xf32>
      %95 = arith.cmpi ne, %47, %46 : vector<16x16xi32>
      %96 = arith.andi %70, %95 : vector<16x16xi1>
      %cst_42 = arith.constant -1.000000e+30 : f32
      %97 = vector.broadcast %cst_42 : f32 to vector<16x16xf32>
      %98 = arith.select %96, %65, %97 : vector<16x16xi1>, vector<16x16xf32>
      %cst_43 = arith.constant dense<0xFF800000> : vector<16xf32>
      %99 = vector.multi_reduction <maximumf>, %98, %cst_43 [1] : vector<16x16xf32> to vector<16xf32>
      %100 = vector.shape_cast %99 : vector<16xf32> to vector<16x1xf32>
      %101 = vector.broadcast %100 : vector<16x1xf32> to vector<16x16xf32>
      %102 = arith.subf %98, %101 : vector<16x16xf32>
      %103 = math.exp %102 : vector<16x16xf32>
      %cst_44 = arith.constant dense<0.000000e+00> : vector<16xf32>
      %104 = vector.multi_reduction <add>, %103, %cst_44 [1] : vector<16x16xf32> to vector<16xf32>
      %105 = vector.shape_cast %104 : vector<16xf32> to vector<16x1xf32>
      %106 = math.log %105 : vector<16x1xf32>
      %107 = arith.addf %100, %106 : vector<16x1xf32>
      %108 = tpu.iota {dimensions = array<i32: 0>} : vector<16x1xi32>
      %c16_i32_45 = arith.constant 16 : i32
      %109 = vector.broadcast %c16_i32_45 : i32 to vector<16x1xi32>
      %110 = arith.cmpi slt, %108, %109 : vector<16x1xi32>
      %111 = arith.subf %107, %94 : vector<16x1xf32>
      %cst_46 = arith.constant 0.000000e+00 : f32
      %112 = vector.broadcast %cst_46 : f32 to vector<16x1xf32>
      %113 = arith.select %110, %111, %112 : vector<16x1xi1>, vector<16x1xf32>
      %114 = vector.shape_cast %113 : vector<16x1xf32> to vector<1x16x1xf32>
      %cst_47 = arith.constant dense<0.000000e+00> : vector<1xf32>
      %115 = vector.multi_reduction <add>, %114, %cst_47 [1, 2] : vector<1x16x1xf32> to vector<1xf32>
      %116 = vector.shape_cast %115 : vector<1xf32> to vector<1x1x1xf32>
      %117 = vector.extract %116[0, 0, 0] : f32 from vector<1x1x1xf32>
      %cst_48 = arith.constant 1.600000e+01 : f32
      %118 = arith.divf %117, %cst_48 : f32
      %cst_49 = arith.constant 2.000000e+00 : f32
      %119 = math.log %cst_49 : f32
      %cst_50 = arith.constant 4.800000e+03 : f32
      %120 = arith.mulf %cst_50, %119 : f32
      %121 = arith.divf %45, %120 : f32
      %122 = arith.subf %118, %121 : f32
      %c0_51 = arith.constant 0 : index
      %c0_52 = arith.constant 0 : index
      %123 = memref.load %arg2[%c0_51, %c0_52] : memref<1x1xf32, #tpu.memory_space<smem>>
      memref.store %122, %arg2[%c0_51, %c0_52] : memref<1x1xf32, #tpu.memory_space<smem>>
    } else {
    }
    return
  }
  func.func @transform_0(%arg0: i32) -> (i32, i32) {
    %c0_i32 = arith.constant 0 : i32
    %c0_i32_0 = arith.constant 0 : i32
    return %c0_i32, %arg0 : i32, i32
  }
  func.func @transform_1(%arg0: i32) -> (i32, i32) {
    %c0_i32 = arith.constant 0 : i32
    %c0_i32_0 = arith.constant 0 : i32
    %c0_i32_1 = arith.constant 0 : i32
    return %c0_i32, %c0_i32_0 : i32, i32
  }
}

</mosaic_0001>

<bundles_post_ra>
// kernel: tpu_custom_call.1
= control target key start
LH: loop header
LB: loop body
LE: loop exit
PB: predicated region body
PF: predicated region fallthrough
CT: control target
= control target key end

     0   :  { %6 = vsyncpa [#allocation6], 0  ;;  %s829_s0 = inlined_call_operand.hbm [shape: bf16[16,384], index: 0, kind: input, shape index: {}]   ;;  %s830_s1 = inlined_call_operand.hbm [shape: f32[1,1], index: 1, kind: output, shape index: {}]  }
   0x1   :  { %8 = vsyncpa [#allocation6 + $0x1], 0 }
   0x2   :  { %9 = vsyncpa [#allocation7], 0  ;;  %s685_s6 = smov 0   ;;  %s687_s7 = smov 0  }
   0x3   :  { %s689_s8 = smov 0   ;;  %s691_s9 = smov 0  }
   0x4 LB: > { %s704_s10 = sadd.s32 4294967295, %s664_s9   ;;  %s707_s11 = sadd.s32 1, %s664_s9   ;;  %s664_s9 = sphi %s691_s9, %s838_s9   ;;  %s660_s8 = sphi %s689_s8, %s837_s8   ;;  %s656_s7 = sphi %s687_s7, %s836_s7   ;;  %s652_s6 = sphi %s685_s6, %s835_s6  }
   0x5   : > { %s19_s12 = ssub.s32 %s664_s9, %s707_s11  ;;  %s22_s13 = sadd.s32 1, %s660_s8 }
   0x6   : > { %p20_p0 = scmp.eq.s32.totalorder %s19_s12, 0  ;;  %p29_p1 = scmp.ne.s32.totalorder %s660_s8, %s656_s7 }
   0x7   : > { %p30_p2 = scmp.eq.s32.totalorder %s664_s9, 0  ;;  %p35_p3 = scmp.ne.s32.totalorder %s656_s7, %s652_s6 }
   0x8   : > { %s717_s14 = scalar_select %p20_p0, %s660_s8, %s22_s13  }
   0x9   : > { %p31_p4 = por %p30_p2, %p29_p1  ;;  %p36_p5 = scmp.eq.s32.totalorder %s704_s10, 0 }
   0xa   : > { %p513_p6 = scmp.lt.s32.totalorder %s664_s9, 3  ;;  %s80_s16 = sand.u32 1, %s660_s8  }
   0xb   : > { %p721_p7 = por %p36_p5, %p35_p3  ;;  %s480_s17 = sshll.u32 %s80_s16, 3 }
   0xc   : > { %s481_s18 = sshll.u32 %s664_s9, 6  ;;  %s84_s22 = scalar_lea.vmem [#allocation5], %s480_s17 }
   0xd   : > { %s730_s21 = scalar_lea.hbm %s829_s0, %s481_s18  ;;  %s90_s23 = sshll.u32 %s84_s22, 4  ;;  %s732_s23 = int_to_ptr.vmem [resolvable:$true] %s90_s23 }
   0xe   : > { %p734_p8 = pnand %p513_p6, %p31_p4  ;;  %s738_s25 = scalar_lea.sflag [#allocation6], %s80_s16 }
   0xf   : > { %s584_s26 = scalar_lea.hbm %s730_s21, 128  ;;  %s589_s29 = scalar_lea.hbm %s829_s0, 384 }
  0x10   : > { %p585_p9 = scmp.ne.s32.totalorder %s730_s21, %s584_s26  ;;  %p586_p10 = pneg %p734_p8 }
  0x11   : > { %p590_p13 = scmp.lt.u32.totalorder %s730_s21, %s829_s0  ;;  %p591_p0 = scmp.lt.u32.totalorder %s589_s29, %s584_s26 }
  0x12   : > { %p587_p11 = pnand %p586_p10, %p585_p9  ;;  %p593_p2 = scmp.lt.u32.totalorder %s584_s26, %s730_s21 }
  0x13   : > { %p592_p1 = por %p591_p0, %p590_p13 }
  0x14   : > { %p588_p12 = pneg %p587_p11 }
  0x15   : > { %p594_p3 = por %p593_p2, %p592_p1 }
  0x17   : > { %p595_p4 = pnand %p594_p3, %p588_p12 }
  0x19   : > { %598 = shalt.err (!%p595_p4)
}
  0x1a   : > { %s599_s3 = scalar_lea.vmem %s732_s23, 128  ;;  %s666_s4 = smov [#allocation5]  }
  0x1b   : > { %p600_p5 = scmp.ne.s32.totalorder %s732_s23, %s599_s3  ;;  %s604_s5 = sshll.u32 %s666_s4, 4  ;;  %s605_s5 = int_to_ptr.vmem [resolvable:$false] %s604_s5 }
  0x1c   : > { %s606_s6 = scalar_lea.vmem %s605_s5, 256  ;;  %p607_p11 = scmp.lt.s32.totalorder %s732_s23, %s605_s5 }
  0x1d   : > { %p602_p6 = pnand %p600_p5, %p586_p10  ;;  %p608_p13 = scmp.lt.s32.totalorder %s606_s6, %s599_s3 }
  0x1f   : > { %p603_p9 = pneg %p602_p6  ;;  %p609_p0 = por %p608_p13, %p607_p11 }
  0x21   : > { %p610_p1 = pnand %p609_p0, %p603_p9 }
  0x23   : > { %613 = shalt.err (!%p610_p1)
}
  0x24   : > { %s667_s12 = smov 192   ;;  %s668_s13 = smov 64  }
  0x25   : > { %s669_s16 = smov 4   ;;  %p482_p10 = scmp.ge.s32.totalorder %s664_s9, 1 }
  0x26   : > { %512 = dma.hbm_to_vmem [thread:$0]  (!%p734_p8), %s730_s21, 128, %s732_s23, %s738_s25, %s667_s12, %s668_s13, %s669_s16  }
  0x27   : > { %p98_p12 = scmp.lt.s32.totalorder %s664_s9, 4 }
  0x29   : > { %p99_p2 = pnand %p482_p10, %p98_p12 }
  0x2a   : > { %s104_s17 = sand.u32 (!%p99_p2), 1, %s656_s7  }
  0x2b   : > { %102 = sbr.rel (%p99_p2) target bundleno = 945 (0x3b1), region = 24  ;;  %s483_s18 = sshll.u32 (!%p99_p2), %s104_s17, 3 }
  0x2c   : > { %s105_s19 = scalar_lea.sflag (!%p99_p2), [#allocation6], %s104_s17  ;;  %s108_s20 = scalar_lea.vmem (!%p99_p2), [#allocation5], %s483_s18 }
  0x32   : > { %643 = dma.done.wait (%p721_p7), %s105_s19, 128  }
  0x33   : > { %645 = vsyncadd (%p721_p7), %s105_s19, 4294967168  ;;  %p484_p3 = scmp.ne.s32.totalorder %s704_s10, 0 }
  0x34   : > { %vm127_vm0 = vcmask (!%p484_p3), 130048   ;;  %vm130_vm1 = vcmask (!%p484_p3), 7168   ;;  %v670_v0 = vmov (!%p484_p3), 0.0  }
  0x35   : > { %126 = sbr.rel (%p484_p3) target bundleno = 60 (0x3c), region = 32  ;;  %128 = vst.msk [vmem:[#allocation2] sm:$0xff] (!%p484_p3), %vm127_vm0, %v670_v0  ;;  %129 = vst.msk [vmem:[#allocation2 + $0x8] sm:$0xff] (!%p484_p3), %vm127_vm0, %v670_v0 }
  0x36   : > { %131 = vst.msk [vmem:[#allocation3] sm:$0xff] (!%p484_p3), %vm130_vm1, %v670_v0  ;;  %132 = vst.msk [vmem:[#allocation3 + $0x8] sm:$0xff] (!%p484_p3), %vm130_vm1, %v670_v0 }
  0x37   : > { %133 = vst.msk [vmem:[#allocation4] sm:$0xff] (!%p484_p3), %vm130_vm1, %v670_v0  ;;  %134 = vst.msk [vmem:[#allocation4 + $0x8] sm:$0xff] (!%p484_p3), %vm130_vm1, %v670_v0 }
  0x3c PF: > { %v135_v1 = vld [vmem:[%s108_s20] sm:$0xff]   ;;  %v671_v2 = vmov 0.0   ;;  %vm672_vm2 = vmmov 0   ;;  %vm169_vm3 = vcmask 7168   ;;  %v184_v41 = vld [vmem:[#allocation2] sm:$0xff]  ;;  %vm235_vm4 = vcmask 130048  }
  0x3d   : > { %493 = vmatprep.subr.bf16.mxu0 %v671_v2  ;;  %v137_v3 = vunpack.c.l.bf16 %v135_v1  ;;  %v138_v4 = vunpack.c.h.bf16 %v135_v1  ;;  %495 = vmatprep.mubr.msk.bf16.mxu0 %vm672_vm2, %v671_v2  ;;  %v172_v29 = vld [vmem:[#allocation3] sm:$0xff]  ;;  %v173_v32 = vld [vmem:[#allocation3 + $0x8] sm:$0xff]  ;;  %v185_v43 = vld [vmem:[#allocation2 + $0x8] sm:$0xff]  ;;  %p486_p7 = scmp.ne.s32.totalorder %s704_s10, 2 }
  0x3e   : > { %494 = vmatpush3.bf16.xpose.msra.mxu0 %v135_v1  ;;  %v161_v35 = vld [vmem:[#allocation4] sm:$0xff]  ;;  %v162_v38 = vld [vmem:[#allocation4 + $0x8] sm:$0xff]  ;;  %v673_v51 = vmov (!%p486_p7), 0  }
  0x3f   : > { %v174_v5 = vmul.f32 %v137_v3, %v137_v3  ;;  %v141_v6 = vadd.f32 1e-12, %v137_v3  ;;  %v149_v7 = vsub.f32 1.0, %v137_v3  ;;  %v142_v8 = vadd.f32 1e-12, %v138_v4  ;;  %566 = vset.pattern.permute.xlu0 (!%p486_p7), %v673_v51  ;;  %567 = vset.pattern.permute.xlu1 (!%p486_p7), %v673_v51 }
  0x40   : > { %v150_v9 = vsub.f32 1.0, %v138_v4  ;;  %v175_v11 = vmul.f32 %v138_v4, %v138_v4  ;;  %v139_v13 = vsub.f32 0.0, %v137_v3  ;;  %v140_v17 = vsub.f32 0.0, %v138_v4 }
  0x41   : > { %176 = vadd.xlane.f32.xlu1 %v174_v5  ;;  %558 = vlog2.f32 %v141_v6  ;;  %v151_v10 = vadd.f32 1e-12, %v149_v7  ;;  %v260_v4 = vlaneseq (!%p486_p7) }
  0x42   : > { %560 = vlog2.f32 %v142_v8  ;;  %v152_v12 = vadd.f32 1e-12, %v150_v9 }
  0x43   : > { %562 = vlog2.f32 %v151_v10  ;;  %v261_v5 = vshrl.u32 (!%p486_p7), %v260_v4, 7  ;;  %v264_v8 = vand.u32 (!%p486_p7), 127, %v260_v4 }
  0x44   : > { %564 = vlog2.f32 %v152_v12 }
  0x45   : > { %178 = vadd.xlane.f32.xlu1 %v175_v11  ;;  %496 = vmatmul.mubr.bf16.vlgmr.msra.gmra.mrb[0].mxu0 %v135_v1  ;;  %v262_v6 = vadd.s32 (!%p486_p7), 8, %v261_v5  ;;  %vm326_vm9 = vcmp.lt.s32.totalorder (!%p486_p7), %v264_v8, 16  ;;  %vm265_vm12 = vcmp.eq.s32.totalorder (!%p486_p7), %v261_v5, %v264_v8  ;;  %vm366_vm15 = vcmp.ne.s32.totalorder (!%p486_p7), %v264_v8, %v261_v5 }
  0x46   : > { %vm368_vm2 = vmand (!%p486_p7), %vm326_vm9, %vm366_vm15 }
  0x47   : > { %vm266_vm13 = vcmp.eq.s32.totalorder (!%p486_p7), %v262_v6, %v264_v8  ;;  %vm367_vm14 = vcmp.ne.s32.totalorder (!%p486_p7), %v264_v8, %v262_v6 }
  0x48   : > { %vm369_vm0 = vmand (!%p486_p7), %vm326_vm9, %vm367_vm14 }
  0x4b   : > { %v559_v14 = vpop.eup %558 }
  0x4c   : > { %v561_v15 = vpop.eup %560  ;;  %v144_v16 = vmul.f32 0.6931472, %v559_v14 }
  0x4d   : > { %v563_v18 = vpop.eup %562  ;;  %v146_v19 = vmul.f32 0.6931472, %v561_v15 }
  0x4e   : > { %v565_v20 = vpop.eup %564  ;;  %v147_v21 = vmul.f32 %v144_v16, %v139_v13  ;;  %v154_v22 = vmul.f32 0.6931472, %v563_v18 }
  0x4f   : > { %v156_v23 = vmul.f32 0.6931472, %v565_v20  ;;  %v148_v25 = vmul.f32 %v146_v19, %v140_v17 }
  0x50   : > { %v157_v24 = vmul.f32 %v154_v22, %v149_v7  ;;  %v329_v7 = vadd.s32 (!%p486_p7), 8, %v262_v6 }
  0x51   : > { %v158_v26 = vmul.f32 %v156_v23, %v150_v9 }
  0x52   : > { %v159_v27 = vsub.f32 %v147_v21, %v157_v24  ;;  %v341_v9 = vand.u32 (!%p486_p7), 15, %v329_v7 }
  0x53   : > { %v160_v28 = vsub.f32 %v148_v25, %v158_v26  ;;  %v334_v26 = vand.u32 (!%p486_p7), 15, %v262_v6 }
  0x54   : > { %163 = vadd.xlane.f32.xlu0 %v159_v27  ;;  %vm355_vm10 = vcmp.eq.s32.totalorder (!%p486_p7), %v264_v8, %v341_v9 }
  0x55   : > { %vm782_vm11 = vmand (!%p486_p7), %vm326_vm9, %vm355_vm10  ;;  %vm354_vm1 = vcmp.eq.s32.totalorder (!%p486_p7), %v264_v8, %v334_v26 }
  0x58   : > { %165 = vadd.xlane.f32.xlu0 %v160_v28 }
  0xce   : > { %v177_v30 = vpop.xlane.xlu1 %176 }
  0xcf   : > { %v180_v31 = vadd.f32 %v177_v30, %v172_v29 }
  0xd1   : > { %182 = vst.msk [vmem:[#allocation3] sm:$0xff] %vm169_vm3, %v180_v31 }
  0xd2   : > { %v179_v33 = vpop.xlane.xlu1 %178 }
  0xd3   : > { %v181_v34 = vadd.f32 %v179_v33, %v173_v32 }
  0xd5   : > { %183 = vst.msk [vmem:[#allocation3 + $0x8] sm:$0xff] %vm169_vm3, %v181_v34 }
  0xd8   : > { %v244_v49 = vld [vmem:[#allocation3] sm:$0xff] (!%p486_p7) }
  0xd9   : > { %568 = vrsqrt.f32 (!%p486_p7), %v244_v49  ;;  %vm269_vm5 = vcmp.eq.f32.partialorder (!%p486_p7), %v244_v49, inf  ;;  %v272_v53 = vand.u32 (!%p486_p7), 2147483648, %v244_v49  ;;  %vm271_vm6 = vcmp.eq.f32.partialorder (!%p486_p7), %v244_v49, 0.0 }
  0xdc   : > { %v245_v50 = vld [vmem:[#allocation3 + $0x8] sm:$0xff] (!%p486_p7) }
  0xdd   : > { %570 = vrsqrt.f32 (!%p486_p7), %v245_v50  ;;  %vm276_vm7 = vcmp.eq.f32.partialorder (!%p486_p7), %v245_v50, inf  ;;  %v279_v56 = vand.u32 (!%p486_p7), 2147483648, %v245_v50  ;;  %vm278_vm8 = vcmp.eq.f32.partialorder (!%p486_p7), %v245_v50, 0.0 }
  0xe1   : > { %v164_v36 = vpop.xlane.xlu0 %163 }
  0xe2   : > { %v167_v37 = vadd.f32 %v164_v36, %v161_v35 }
  0xe3   : > { %v569_v52 = vpop.eup (!%p486_p7), %568 }
  0xe4   : > { %170 = vst.msk [vmem:[#allocation4] sm:$0xff] %vm169_vm3, %v167_v37  ;;  %v268_v55 = vmul.f32 (!%p486_p7), %v569_v52, %v244_v49 }
  0xe5   : > { %v166_v39 = vpop.xlane.xlu0 %165 }
  0xe6   : > { %v168_v40 = vadd.f32 %v166_v39, %v162_v38  ;;  %v270_v58 = vsel (!%p486_p7), %vm269_vm5, %v244_v49, %v268_v55  ;;  %vm356_vm5 = vmand (!%p486_p7), %vm326_vm9, %vm354_vm1 }
  0xe7   : > { %v571_v54 = vpop.eup (!%p486_p7), %570  ;;  %v273_v59 = vsel (!%p486_p7), %vm271_vm6, %v272_v53, %v270_v58 }
  0xe8   : > { %171 = vst.msk [vmem:[#allocation4 + $0x8] sm:$0xff] %vm169_vm3, %v168_v40  ;;  %v275_v57 = vmul.f32 (!%p486_p7), %v571_v54, %v245_v50  ;;  %v281_v61 = vmax.f32 (!%p486_p7), %v273_v59, 1e-12 }
  0xea   : > { %v277_v60 = vsel (!%p486_p7), %vm276_vm7, %v245_v50, %v275_v57  ;;  %572 = vrcp.f32 (!%p486_p7), %v281_v61 }
  0xeb   : > { %v280_v62 = vsel (!%p486_p7), %vm278_vm8, %v279_v56, %v277_v60  ;;  %v246_v51 = vld [vmem:[#allocation4] sm:$0xff] (!%p486_p7) }
  0xec   : > { %v282_v63 = vmax.f32 (!%p486_p7), %v280_v62, 1e-12  ;;  %v248_v53 = vsel (!%p486_p7), %vm169_vm3, %v246_v51, 0.0 }
  0xee   : > { %574 = vrcp.f32 (!%p486_p7), %v282_v63 }
  0xef   : > { %v247_v52 = vld [vmem:[#allocation4 + $0x8] sm:$0xff] (!%p486_p7) }
  0xf0   : > { %v249_v54 = vsel (!%p486_p7), %vm169_vm3, %v247_v52, 0.0 }
  0xf1   : > { %v250_v55 = vadd.f32 (!%p486_p7), %v249_v54, %v248_v53 }
  0xf4   : > { %v573_v0 = vpop.eup (!%p486_p7), %572 }
  0xf5   : > { %289 = vperm.xlu0 (!%p486_p7), %566, %v573_v0   ;;  %v308_v1 = vmul.f32 (!%p486_p7), 2.0, %v573_v0 }
  0xf7   : > { %312 = vperm.xlu1 (!%p486_p7), %567, %v308_v1  }
  0xf8   : > { %v575_v2 = vpop.eup (!%p486_p7), %574 }
  0xf9   : > { %v309_v3 = vmul.f32 (!%p486_p7), 2.0, %v575_v2  ;;  %294 = vperm.xlu0 (!%p486_p7), %566, %v575_v2  }
  0xfb   : > { %317 = vperm.xlu1 (!%p486_p7), %567, %v309_v3  }
 0x117   : > { %241 = sbr.rel (%p486_p7) target bundleno = 930 (0x3a2), region = 36 }
 0x118   : > { %v226_v42 = vpop.f32.mrb[0].mxu0 }
 0x119   : > { %v233_v44 = vadd.f32 %v226_v42, %v184_v41  ;;  %v497_v45 = vpop.f32.mrb[1].mxu0 }
 0x11a   : > { %v229_v46 = vpop.f32.mrb[2].mxu0 }
 0x11b   : > { %236 = vst.msk [vmem:[#allocation2] sm:$0xff] %vm235_vm4, %v233_v44  ;;  %v234_v47 = vadd.f32 %v229_v46, %v185_v43  ;;  %v498_v48 = vpop.f32.mrb[3].mxu0 }
 0x11d   : > { %237 = vst.msk [vmem:[#allocation2 + $0x8] sm:$0xff] %vm235_vm4, %v234_v47 }
 0x122   : > { %v242_v22 = vld [vmem:[#allocation2] sm:$0xff] }
 0x124   : > { %v243_v24 = vld [vmem:[#allocation2 + $0x8] sm:$0xff] }
 0x174   : > { %v290_v11 = vpop.permute.xlu0 %289 }
 0x175   : > { %v297_v12 = vsel %vm265_vm12, %v290_v11, 0.0 }
 0x176   : > { %v299_v15 = vsel %vm235_vm4, %v297_v12, 0.0  ;;  %v313_v18 = vpop.permute.xlu1 %312 }
 0x177   : > { %v320_v28 = vmul.f32 %v313_v18, %v242_v22 }
 0x178   : > { %v295_v13 = vpop.permute.xlu0 %294 }
 0x179   : > { %v298_v14 = vsel %vm266_vm13, %v295_v13, 0.0 }
 0x17a   : > { %v300_v16 = vsel %vm235_vm4, %v298_v14, 0.0  ;;  %v318_v23 = vpop.permute.xlu1 %317 }
 0x17b   : > { %v301_v17 = vadd.f32 %v300_v16, %v299_v15  ;;  %v321_v29 = vmul.f32 %v318_v23, %v243_v24 }
 0x17d   : > { %v302_v19 = vrot.slane %v301_v17, 4 }
 0x17f   : > { %v303_v20 = vadd.f32 %v302_v19, %v301_v17 }
 0x181   : > { %v304_v21 = vrot.slane %v303_v20, 2 }
 0x183   : > { %v305_v25 = vadd.f32 %v304_v21, %v303_v20 }
 0x185   : > { %v306_v27 = vrot.slane %v305_v25, 1 }
 0x187   : > { %v307_v30 = vadd.f32 %v306_v27, %v305_v25 }
 0x189   : > { %v322_v31 = vmul.f32 %v320_v28, %v307_v30  ;;  %v323_v32 = vmul.f32 %v321_v29, %v307_v30 }
 0x18b   : > { %v371_v33 = vsel %vm369_vm0, %v323_v32, -1e+30  ;;  %v370_v34 = vsel %vm368_vm2, %v322_v31, -1e+30  ;;  %v359_v35 = vsel %vm782_vm11, %v323_v32, 0.0  ;;  %v358_v38 = vsel %vm356_vm5, %v322_v31, 0.0 }
 0x18c   : > { %v375_v36 = vsel %vm235_vm4, %v371_v33, -inf  ;;  %v372_v37 = vsel %vm235_vm4, %v370_v34, -inf  ;;  %v360_v39 = vsel %vm235_vm4, %v358_v38, 0.0  ;;  %v363_v50 = vsel %vm235_vm4, %v359_v35, 0.0 }
 0x18d   : > { %376 = vmax.xlane.f32.xlu1 %v375_v36  ;;  %373 = vmax.xlane.f32.xlu0 %v372_v37 }
 0x191   : > { %361 = vadd.xlane.f32.xlu1 %v360_v39 }
 0x195   : > { %251 = vadd.xlane.f32.xlu1 %v250_v55 }
 0x21a   : > { %v377_v40 = vpop.xlane.xlu1 %376  ;;  %v374_v41 = vpop.xlane.xlu0 %373 }
 0x21b   : > { %v379_v42 = vsub.f32 %v371_v33, %v377_v40  ;;  %v378_v43 = vsub.f32 %v370_v34, %v374_v41 }
 0x21d   : > { %v380_v44 = vmul.f32 1.442695, %v378_v43  ;;  %v382_v45 = vmul.f32 1.442695, %v379_v42 }
 0x21e   : > { %v362_v63 = vpop.xlane.xlu1 %361 }
 0x21f   : > { %576 = vpow2.f32 %v380_v44 }
 0x220   : > { %578 = vpow2.f32 %v382_v45 }
 0x222   : > { %v252_v7 = vpop.xlane.xlu1 %251 }
 0x223   : > { %v253_v8 = vrot.slane %v252_v7, 4 }
 0x225   : > { %v254_v9 = vadd.f32 %v253_v8, %v252_v7 }
 0x227   : > { %v255_v10 = vrot.slane %v254_v9, 2 }
 0x229   : > { %v577_v46 = vpop.eup %576  ;;  %v256_v11 = vadd.f32 %v255_v10, %v254_v9 }
 0x22a   : > { %v384_v47 = vsel %vm235_vm4, %v577_v46, 0.0  ;;  %v579_v48 = vpop.eup %578 }
 0x22b   : > { %385 = vadd.xlane.f32.xlu0 %v384_v47  ;;  %v387_v49 = vsel %vm235_vm4, %v579_v48, 0.0  ;;  %v257_v12 = vrot.slane %v256_v11, 1 }
 0x22d   : > { %v258_v13 = vadd.f32 %v257_v12, %v256_v11 }
 0x22f   : > { %388 = vadd.xlane.f32.xlu0 %v387_v49  ;;  %499 = vpush %v258_v13 }
 0x233   : > { %364 = vadd.xlane.f32.xlu0 %v363_v50 }
 0x260   : > { %s500_s9 = spop %499 }
 0x261   : > { %s417_s15 = smul.f32 0.00030056146, %s500_s9 }
 0x2b8   : > { %v386_v56 = vpop.xlane.xlu0 %385 }
 0x2b9   : > { %580 = vlog2.f32 %v386_v56 }
 0x2bc   : > { %v389_v57 = vpop.xlane.xlu0 %388 }
 0x2bd   : > { %582 = vlog2.f32 %v389_v57 }
 0x2c0   : > { %v365_v2 = vpop.xlane.xlu0 %364 }
 0x2c3   : > { %v581_v58 = vpop.eup %580 }
 0x2c4   : > { %v391_v59 = vmul.f32 0.6931472, %v581_v58 }
 0x2c6   : > { %v394_v60 = vadd.f32 %v391_v59, %v374_v41 }
 0x2c7   : > { %v583_v61 = vpop.eup %582 }
 0x2c8   : > { %v393_v62 = vmul.f32 0.6931472, %v583_v61  ;;  %v396_v1 = vsub.f32 %v394_v60, %v362_v63 }
 0x2ca   : > { %v395_v0 = vadd.f32 %v393_v62, %v377_v40  ;;  %v400_v5 = vsel %vm169_vm3, %v396_v1, 0.0 }
 0x2cc   : > { %v397_v3 = vsub.f32 %v395_v0, %v365_v2 }
 0x2ce   : > { %v401_v4 = vsel %vm169_vm3, %v397_v3, 0.0 }
 0x2cf   : > { %v402_v6 = vadd.f32 %v401_v4, %v400_v5 }
 0x2d1   : > { %403 = vadd.xlane.f32.xlu0 %v402_v6 }
 0x35e   : > { %v404_v14 = vpop.xlane.xlu0 %403 }
 0x35f   : > { %v405_v15 = vrot.slane %v404_v14, 4 }
 0x361   : > { %v406_v16 = vadd.f32 %v405_v15, %v404_v14 }
 0x363   : > { %v407_v17 = vrot.slane %v406_v16, 2 }
 0x365   : > { %v408_v18 = vadd.f32 %v407_v17, %v406_v16 }
 0x367   : > { %v409_v19 = vrot.slane %v408_v18, 1 }
 0x369   : > { %v410_v20 = vadd.f32 %v409_v19, %v408_v18 }
 0x36b   : > { %501 = vpush %v410_v20 }
 0x39c   : > { %s502_s21 = spop %501 }
 0x39d   : > { %s414_s22 = smul.f32 0.0625, %s502_s21 }
 0x39f   : > { %s418_s23 = ssub.f32 %s414_s22, %s417_s15 }
 0x3a1   : > { %420 = sst [smem:[#allocation8]] %s418_s23 }
 0x3a2 PF: > { %p514_p8 = scmp.eq.s32.totalorder %s704_s10, 2  ;;  %s614_s26 = scalar_lea.hbm %s830_s1, 16 }
 0x3a3   : > { %p615_p4 = scmp.ne.s32.totalorder %s830_s1, %s614_s26  ;;  %p620_p9 = scmp.lt.u32.totalorder %s614_s26, %s830_s1 }
 0x3a5   : > { %p616_p5 = pnand %p615_p4, %p514_p8 }
 0x3a7   : > { %p617_p6 = pneg %p616_p5 }
 0x3a9   : > { %p622_p11 = pnand %p620_p9, %p617_p6 }
 0x3ab   : > { %625 = shalt.err (!%p622_p11)
}
 0x3ac   : > { %s674_s2 = smov [#allocation8]  }
 0x3ad   : > { %506 = dma.smem_to_hbm (%p514_p8), %s674_s2, 16, %s830_s1, [#allocation7]  }
 0x3ae   : > { %647 = dma.done.wait (%p514_p8), [#allocation7], 16  }
 0x3af   : > { %649 = vsyncadd (%p514_p8), [#allocation7], 4294967280 }
 0x3b0   : > { %434 = sfence }
 0x3b1 PF: > { %p12_p13 = scmp.ge.s32.totalorder %s707_s11, 5   ;;  %s835_s6 = smov %s656_s7 }
 0x3b2   : > { %s836_s7 = smov %s660_s8  ;;  %s837_s8 = smov %s717_s14 }
 0x3b3   : > { %s838_s9 = smov %s707_s11  ;;  %14 = sbr.rel (!%p12_p13) target bundleno = 4 (0x4), region = 70 }
 0x3ba   :  { %440 = vsyncpa [#allocation6], 1 }
 0x3bb   :  { %442 = vsyncpa [#allocation6 + $0x1], 1 }
 0x3bc   :  { %443 = vsyncpa [#allocation7], 1 }
 0x3bd   :  { %445 = vsyncpa [#allocation7 + $0x1], 1 }

</bundles_post_ra>
